<compile_context>
chip_gen: v7x
topology: tpu7x:2x2x1
jax: 0.10.0
libtpu: 0.0.40
codegen_flags: <defaults>
</compile_context>

<pallas_src>
import jax
import jax.numpy as jnp
from jax.experimental import pallas as pl
from jax.experimental.pallas import tpu as pltpu

EPS = 1e-5


def prenorm_kernel(x_ref, gamma_ref, beta_ref, w_ref, b_ref, o_ref):
    # x tile: (tile_rows, D); D on the lane axis.
    x = x_ref[...]
    xf = x.astype(jnp.float32)
    d = x_ref.shape[-1]
    inv_d = 1.0 / d

    # LayerNorm stats in one sweep: sum and sum-of-squares (biased variance,
    # matching torch.nn.LayerNorm). Arithmetic kept in f32.
    s1 = jnp.sum(xf, axis=-1, keepdims=True)
    s2 = jnp.sum(xf * xf, axis=-1, keepdims=True)
    mean = s1 * inv_d
    var = jnp.maximum(s2 * inv_d - mean * mean, 0.0)
    inv = jax.lax.rsqrt(var + EPS)

    # gamma/beta/bias arrive already in f32 (casts hoisted to the wrapper).
    normed = (xf - mean) * inv * gamma_ref[...] + beta_ref[...]

    # fn(x) = Linear(D, D): feed the MXU in the weight dtype (bf16 in the demo),
    # accumulate in f32.
    y = jnp.dot(normed.astype(w_ref.dtype), w_ref[...],
                preferred_element_type=jnp.float32)
    y = y + b_ref[...]

    o_ref[...] = y.astype(o_ref.dtype)


def _round_up(x, m):
    return ((x + m - 1) // m) * m


def _vmem_cap_bytes():
    """Generation-aware scoped-VMEM ceiling."""
    try:
        physical = pltpu.get_tpu_info().vmem_capacity_bytes
    except Exception:
        physical = 64 << 20  # conservative assumption (v7x per-TC VMEM)
    if physical >= (96 << 20):
        return 100 << 20     # v5e / v6e: 128 MiB physical
    return 48 << 20          # v7x: 64 MiB physical (32 MiB default scoped)


def _choose_tile_rows(N, D, x_itemsize, out_itemsize, w_itemsize, requested, vmem_cap):
    """Pick the largest row tile that fits the VMEM budget, keeps >=2 grid
    steps (v7x megacore), and (if possible) divides N exactly."""
    # Per-row cost: double-buffered bf16 in/out tiles + f32 temporaries
    # (xf, normed, y, slack) that the kernel materializes.
    bytes_per_row = (2 * D * x_itemsize
                     + 2 * D * out_itemsize
                     + 4 * D * 4)
    resident = 2 * D * D * w_itemsize + 6 * D * 4 + (2 << 20)
    avail = max(vmem_cap - resident, 1 << 20)
    max_rows = max(8, (avail // bytes_per_row) // 8 * 8)

    tile = min(int(requested), int(max_rows))
    # Keep at least 2 grid steps when there are enough rows so the "parallel"
    # axis can be sharded across v7x's two TensorCores.
    if N >= 16:
        tile = min(tile, _round_up((N + 1) // 2, 8))
    tile = max(8, (tile // 8) * 8)

    # Prefer an exact divisor of N (avoids a ragged last block) if one exists
    # within 2x of the chosen tile.
    if N % tile != 0:
        for cand in range(tile, max(8, tile // 2) - 1, -8):
            if N % cand == 0:
                tile = cand
                break
    return tile


def prenorm(x, gamma, beta, w, b, *, tile_rows=2048):
    """x: (B, S, D) -> (B, S, D). LayerNorm(D) then Linear(D, D)."""
    B, S, D = x.shape
    N = B * S

    # Hoist constant casts out of the kernel: small params live in f32 once.
    gamma2 = gamma.astype(jnp.float32).reshape(1, D)
    beta2 = beta.astype(jnp.float32).reshape(1, D)
    b2 = b.astype(jnp.float32).reshape(1, D)

    x2 = x.reshape(N, D)

    x_itemsize = jnp.dtype(x.dtype).itemsize
    w_itemsize = jnp.dtype(w.dtype).itemsize
    out_itemsize = x_itemsize

    vmem_cap = _vmem_cap_bytes()
    tile_rows = _choose_tile_rows(N, D, x_itemsize, out_itemsize, w_itemsize,
                                  tile_rows, vmem_cap)
    num_tiles = pl.cdiv(N, tile_rows)

    # VMEM budget: double-buffered I/O tiles + f32 temporaries + resident
    # weight/params + headroom; clamped to the generation-aware cap.
    est = (2 * tile_rows * D * x_itemsize
           + 2 * tile_rows * D * out_itemsize
           + 4 * tile_rows * D * 4
           + 2 * D * D * w_itemsize
           + 6 * D * 4
           + (4 << 20))
    vmem_limit = int(min(max(est, 16 << 20), vmem_cap))

    cost = pl.CostEstimate(
        flops=2 * N * D * D,
        transcendentals=0,
        bytes_accessed=(N * D * x_itemsize          # input rows
                        + N * D * out_itemsize      # output rows
                        + D * D * w_itemsize        # weight
                        + 3 * D * 4),               # gamma/beta/bias
    )

    # No jnp.pad: the grid covers N with cdiv; a ragged last block (if any) is
    # handled by Pallas — stats are per-row and OOB writes are masked.
    out = pl.pallas_call(
        prenorm_kernel,
        out_shape=jax.ShapeDtypeStruct((N, D), x.dtype),
        grid_spec=pltpu.PrefetchScalarGridSpec(
            num_scalar_prefetch=0,
            grid=(num_tiles,),
            in_specs=[
                pl.BlockSpec((tile_rows, D), lambda i: (i, 0)),  # x rows
                pl.BlockSpec((1, D), lambda i: (0, 0)),          # gamma (f32, resident)
                pl.BlockSpec((1, D), lambda i: (0, 0)),          # beta  (f32, resident)
                pl.BlockSpec((D, D), lambda i: (0, 0)),          # W     (resident)
                pl.BlockSpec((1, D), lambda i: (0, 0)),          # bias  (f32, resident)
            ],
            out_specs=pl.BlockSpec((tile_rows, D), lambda i: (i, 0)),
        ),
        compiler_params=pltpu.CompilerParams(
            dimension_semantics=("parallel",),
            vmem_limit_bytes=vmem_limit),
        cost_estimate=cost,
    )(x2, gamma2, beta2, w, b2)

    return out.reshape(B, S, D)


def prenorm_ref(x, gamma, beta, w, b):
    xf = x.astype(jnp.float32)
    mean = jnp.mean(xf, axis=-1, keepdims=True)
    var = jnp.mean((xf - mean) ** 2, axis=-1, keepdims=True)
    normed = (xf - mean) * jax.lax.rsqrt(var + EPS)
    normed = normed * gamma.astype(jnp.float32) + beta.astype(jnp.float32)
    y = normed @ w.astype(jnp.float32) + b.astype(jnp.float32)
    return y.astype(x.dtype)


if __name__ == "__main__":
    key = jax.random.PRNGKey(0)
    # Lane-dense feature dim (multiple of 128); N = B*S = 512 rows. The adaptive
    # tile picker clamps the 2048-row target to 256 so the grid has 2 steps
    # (even split across v7x's 2 TensorCores) with no ragged block.
    B, S, D = 2, 256, 128

    kx, kw = jax.random.split(key)
    # bf16 HBM traffic for activations and weights; stats stay f32 in-kernel.
    x = jax.random.normal(kx, (B, S, D), dtype=jnp.float32).astype(jnp.bfloat16)

    # LayerNorm params: PyTorch default init (ones / zeros).
    gamma = jnp.ones((D,), dtype=jnp.float32)
    beta = jnp.zeros((D,), dtype=jnp.float32)

    # fn = Linear(D, D): deterministic synthetic weights in bf16.
    w = (jax.random.normal(kw, (D, D), dtype=jnp.float32)
         * (1.0 / jnp.sqrt(D))).astype(jnp.bfloat16)
    b = jnp.zeros((D,), dtype=jnp.float32)

    out = prenorm(x, gamma, beta, w, b)
    out = jax.block_until_ready(out)

    ref = prenorm_ref(x, gamma, beta, w, b)
    assert out.shape == (B, S, D)
    assert jnp.allclose(out.astype(jnp.float32), ref.astype(jnp.float32),
                        atol=6e-2, rtol=6e-2), "mismatch vs reference"

    print("KERNEL_OK")
</pallas_src>

<mosaic_0001>
module attributes {stable_mosaic.version = 11 : i64} {
  func.func @prenorm_kernel(%arg0: i32, %arg1: memref<256x128xbf16, #tpu.memory_space<vmem>>, %arg2: memref<1x128xf32, #tpu.memory_space<vmem>>, %arg3: memref<1x128xf32, #tpu.memory_space<vmem>>, %arg4: memref<128x128xbf16, #tpu.memory_space<vmem>>, %arg5: memref<1x128xf32, #tpu.memory_space<vmem>>, %arg6: memref<256x128xbf16, #tpu.memory_space<vmem>>) attributes {dimension_semantics = [#tpu.dimension_semantics<parallel>], iteration_bounds = array<i64: 2>, scalar_prefetch = 0 : i64, scratch_operands = 0 : i64, tpu.core_type = #tpu.core_type<tc>, window_params = [{transform_indices = @transform_0, window_bounds = array<i64: 256, 128>}, {pipeline_mode = #tpu.pipeline_mode<synchronous>, transform_indices = @transform_1, window_bounds = array<i64: 1, 128>}, {pipeline_mode = #tpu.pipeline_mode<synchronous>, transform_indices = @transform_2, window_bounds = array<i64: 1, 128>}, {pipeline_mode = #tpu.pipeline_mode<synchronous>, transform_indices = @transform_3, window_bounds = array<i64: 128, 128>}, {pipeline_mode = #tpu.pipeline_mode<synchronous>, transform_indices = @transform_4, window_bounds = array<i64: 1, 128>}, {transform_indices = @transform_5, window_bounds = array<i64: 256, 128>}]} {
    %c0 = arith.constant 0 : index
    %c0_0 = arith.constant 0 : index
    %0 = vector.load %arg1[%c0, %c0_0] : memref<256x128xbf16, #tpu.memory_space<vmem>>, vector<256x128xbf16>
    %1 = arith.extf %0 : vector<256x128xbf16> to vector<256x128xf32>
    %cst = arith.constant dense<0.000000e+00> : vector<256xf32>
    %2 = vector.multi_reduction <add>, %1, %cst [1] : vector<256x128xf32> to vector<256xf32>
    %3 = vector.shape_cast %2 : vector<256xf32> to vector<256x1xf32>
    %4 = arith.mulf %1, %1 : vector<256x128xf32>
    %cst_1 = arith.constant dense<0.000000e+00> : vector<256xf32>
    %5 = vector.multi_reduction <add>, %4, %cst_1 [1] : vector<256x128xf32> to vector<256xf32>
    %6 = vector.shape_cast %5 : vector<256xf32> to vector<256x1xf32>
    %cst_2 = arith.constant 7.812500e-03 : f32
    %7 = vector.broadcast %cst_2 : f32 to vector<256x1xf32>
    %8 = arith.mulf %3, %7 : vector<256x1xf32>
    %cst_3 = arith.constant 7.812500e-03 : f32
    %9 = vector.broadcast %cst_3 : f32 to vector<256x1xf32>
    %10 = arith.mulf %6, %9 : vector<256x1xf32>
    %11 = arith.mulf %8, %8 : vector<256x1xf32>
    %12 = arith.subf %10, %11 : vector<256x1xf32>
    %cst_4 = arith.constant 0.000000e+00 : f32
    %13 = vector.broadcast %cst_4 : f32 to vector<256x1xf32>
    %14 = arith.maximumf %12, %13 : vector<256x1xf32>
    %cst_5 = arith.constant 9.99999974E-6 : f32
    %15 = vector.broadcast %cst_5 : f32 to vector<256x1xf32>
    %16 = arith.addf %14, %15 : vector<256x1xf32>
    %17 = math.rsqrt %16 : vector<256x1xf32>
    %18 = vector.broadcast %8 : vector<256x1xf32> to vector<256x128xf32>
    %19 = arith.subf %1, %18 : vector<256x128xf32>
    %20 = vector.broadcast %17 : vector<256x1xf32> to vector<256x128xf32>
    %21 = arith.mulf %19, %20 : vector<256x128xf32>
    %c0_6 = arith.constant 0 : index
    %c0_7 = arith.constant 0 : index
    %22 = vector.load %arg2[%c0_6, %c0_7] : memref<1x128xf32, #tpu.memory_space<vmem>>, vector<1x128xf32>
    %23 = vector.broadcast %22 : vector<1x128xf32> to vector<256x128xf32>
    %24 = arith.mulf %21, %23 : vector<256x128xf32>
    %c0_8 = arith.constant 0 : index
    %c0_9 = arith.constant 0 : index
    %25 = vector.load %arg3[%c0_8, %c0_9] : memref<1x128xf32, #tpu.memory_space<vmem>>, vector<1x128xf32>
    %26 = vector.broadcast %25 : vector<1x128xf32> to vector<256x128xf32>
    %27 = arith.addf %24, %26 : vector<256x128xf32>
    %28 = arith.truncf %27 : vector<256x128xf32> to vector<256x128xbf16>
    %c0_10 = arith.constant 0 : index
    %c0_11 = arith.constant 0 : index
    %29 = vector.load %arg4[%c0_10, %c0_11] : memref<128x128xbf16, #tpu.memory_space<vmem>>, vector<128x128xbf16>
    %cst_12 = arith.constant dense<0.000000e+00> : vector<256x128xf32>
    %30 = tpu.matmul %28, %29, %cst_12 {dimension_numbers = #tpu.dot_dimension_numbers<[1], [0], [0], [1], [0, 0, 1, 1], [], []>} : vector<256x128xbf16>, vector<128x128xbf16>, vector<256x128xf32> -> vector<256x128xf32>
    %c0_13 = arith.constant 0 : index
    %c0_14 = arith.constant 0 : index
    %31 = vector.load %arg5[%c0_13, %c0_14] : memref<1x128xf32, #tpu.memory_space<vmem>>, vector<1x128xf32>
    %32 = vector.broadcast %31 : vector<1x128xf32> to vector<256x128xf32>
    %33 = arith.addf %30, %32 : vector<256x128xf32>
    %34 = arith.truncf %33 : vector<256x128xf32> to vector<256x128xbf16>
    %c0_15 = arith.constant 0 : index
    %c0_16 = arith.constant 0 : index
    %35 = vector.load %arg6[%c0_15, %c0_16] : memref<256x128xbf16, #tpu.memory_space<vmem>>, vector<256x128xbf16>
    tpu.vector_store %arg6[%c0_15, %c0_16], %34 {strides = array<i32>} : memref<256x128xbf16, #tpu.memory_space<vmem>>, vector<256x128xbf16>,
    return
  }
  func.func @transform_0(%arg0: i32) -> (i32, i32) {
    %c0_i32 = arith.constant 0 : i32
    %c0_i32_0 = arith.constant 0 : i32
    return %arg0, %c0_i32 : i32, i32
  }
  func.func @transform_1(%arg0: i32) -> (i32, i32) {
    %c0_i32 = arith.constant 0 : i32
    %c0_i32_0 = arith.constant 0 : i32
    %c0_i32_1 = arith.constant 0 : i32
    return %c0_i32, %c0_i32_0 : i32, i32
  }
  func.func @transform_2(%arg0: i32) -> (i32, i32) {
    %c0_i32 = arith.constant 0 : i32
    %c0_i32_0 = arith.constant 0 : i32
    %c0_i32_1 = arith.constant 0 : i32
    return %c0_i32, %c0_i32_0 : i32, i32
  }
  func.func @transform_3(%arg0: i32) -> (i32, i32) {
    %c0_i32 = arith.constant 0 : i32
    %c0_i32_0 = arith.constant 0 : i32
    %c0_i32_1 = arith.constant 0 : i32
    return %c0_i32, %c0_i32_0 : i32, i32
  }
  func.func @transform_4(%arg0: i32) -> (i32, i32) {
    %c0_i32 = arith.constant 0 : i32
    %c0_i32_0 = arith.constant 0 : i32
    %c0_i32_1 = arith.constant 0 : i32
    return %c0_i32, %c0_i32_0 : i32, i32
  }
  func.func @transform_5(%arg0: i32) -> (i32, i32) {
    %c0_i32 = arith.constant 0 : i32
    %c0_i32_0 = arith.constant 0 : i32
    return %arg0, %c0_i32 : i32, i32
  }
}

</mosaic_0001>

<bundles_post_ra>
// kernel: tpu_custom_call.1
= control target key start
LH: loop header
LB: loop body
LE: loop exit
PB: predicated region body
PF: predicated region fallthrough
CT: control target
= control target key end

     0   :  { %10 = vsyncpa [#allocation3], 0  ;;  %s2722_s0 = inlined_call_operand.hbm [shape: bf16[512,128], index: 0, kind: input, shape index: {}]   ;;  %s2723_s1 = inlined_call_operand.vmem [shape: f32[1,128], index: 1, kind: input, shape index: {}]   ;;  %s2724_s2 = inlined_call_operand.vmem [shape: f32[1,128], index: 2, kind: input, shape index: {}]   ;;  %s2725_s3 = inlined_call_operand.hbm [shape: bf16[128,128], index: 3, kind: input, shape index: {}]   ;;  %s2726_s4 = inlined_call_operand.vmem [shape: f32[1,128], index: 4, kind: input, shape index: {}]   ;;  %s2727_s5 = inlined_call_operand.hbm [shape: bf16[512,128], index: 5, kind: output, shape index: {}]  }
   0x1   :  { %12 = vsyncpa [#allocation3 + $0x1], 0 }
   0x2   :  { %13 = vsyncpa [#allocation6], 0 }
   0x3   :  { %14 = vsyncpa [#allocation4], 0 }
   0x4   :  { %16 = vsyncpa [#allocation4 + $0x1], 0  ;;  %s2011_s18 = smov 0   ;;  %s2013_s19 = smov 0  }
   0x5   :  { %s2015_s20 = smov 0   ;;  %s2017_s21 = smov 0  }
   0x6 LB: > { %s2032_s22 = sadd.s32 4294967295, %s1972_s21   ;;  %s1356_s23 = sadd.s32 4294967294, %s1972_s21   ;;  %s1972_s21 = sphi %s2017_s21, %s2747_s21   ;;  %s1968_s20 = sphi %s2015_s20, %s2746_s20   ;;  %s1964_s19 = sphi %s2013_s19, %s2745_s19   ;;  %s1960_s18 = sphi %s2011_s18, %s2744_s18  }
   0x7   : > { %p42_p0 = scmp.ne.s32.totalorder %s1964_s19, %s1960_s18  ;;  %p2728_p1 = scmp.eq.s32.totalorder %s2032_s22, 0 }
   0x8   : > { %p156_p3 = scmp.eq.s32.totalorder %s1356_s23, 1  ;;  %p1357_p5 = scmp.ge.s32.totalorder %s1972_s21, 1 }
   0x9   : > { %p2041_p4 = por %p2728_p1, %p42_p0  ;;  %p163_p7 = scmp.lt.s32.totalorder %s1972_s21, 3 }
   0xa   : > { %p2046_p6 = por %p156_p3, %p42_p0  ;;  %s1974_s27 = smov [#allocation5]  }
   0xb   : > { %s2731_s24 = scalar_select %p2041_p4, 1, 0 }
   0xc   : > { %s2732_s25 = scalar_select %p2046_p6, 1, 0 }
   0xd   : > { %p2051_p8 = pnand %p1357_p5, %p163_p7  ;;  %s181_s28 = sshll.u32 %s1974_s27, 4  ;;  %s2055_s28 = int_to_ptr.vmem [resolvable:$true] %s181_s28 }
   0xe   : > { %s2067_s30 = sadd.s32 1, %s1972_s21   ;;  %s29_s6 = sadd.s32 1, %s1968_s20 }
   0xf   : > { %s2733_s26 = scalar_select %p2051_p8, 1, 0 }
  0x10   : > { %p1719_p9 = pneg %p2051_p8  ;;  %s26_s7 = ssub.s32 %s1972_s21, %s2067_s30 }
  0x11   : > { %s1844_s10 = scalar_lea.hbm %s2725_s3, 1024 }
  0x12   : > { %p2062_p11 = pnand %p1719_p9, %p2728_p1  ;;  %p1845_p12 = scmp.ne.s32.totalorder %s2725_s3, %s1844_s10 }
  0x13   : > { %p1851_p5 = scmp.lt.u32.totalorder %s1844_s10, %s2725_s3 }
  0x14   : > { %p1846_p13 = pneg %p2062_p11 }
  0x16   : > { %p1847_p0 = pnand %p1846_p13, %p1845_p12 }
  0x18   : > { %p1848_p3 = pneg %p1847_p0 }
  0x1a   : > { %p1853_p7 = pnand %p1851_p5, %p1848_p3 }
  0x1c   : > { %1856 = shalt.err (!%p1853_p7)
}
  0x1d   : > { %s1857_s15 = scalar_lea.vmem %s2055_s28, 1024  ;;  %p1865_p2 = scmp.lt.s32.totalorder %s2055_s28, %s2055_s28 }
  0x1e   : > { %p1858_p9 = scmp.ne.s32.totalorder %s2055_s28, %s1857_s15  ;;  %p1866_p6 = scmp.lt.s32.totalorder %s1857_s15, %s1857_s15 }
  0x20   : > { %p1860_p10 = pnand %p1858_p9, %p1846_p13  ;;  %p1867_p4 = por %p1866_p6, %p1865_p2 }
  0x22   : > { %p1861_p1 = pneg %p1860_p10 }
  0x24   : > { %p1868_p8 = pnand %p1867_p4, %p1861_p1 }
  0x26   : > { %1871 = shalt.err (!%p1868_p8)
}
  0x27   : > { %s1975_s16 = smov 64   ;;  %s1976_s17 = smov 4  }
  0x28   : > { %1722 = dma.hbm_to_vmem [thread:$0]  (!%p2062_p11), %s2725_s3, 1024, %s2055_s28, [#allocation6], %s1975_s16, %s1975_s16, %s1976_s17  }
  0x29   : > { %p27_p1 = scmp.eq.s32.totalorder %s26_s7, 0  ;;  %p36_p2 = scmp.ne.s32.totalorder %s1968_s20, %s1964_s19 }
  0x2a   : > { %p37_p4 = scmp.eq.s32.totalorder %s1972_s21, 0  ;;  %p1732_p6 = scmp.lt.s32.totalorder %s1972_s21, 2 }
  0x2b   : > { %s2101_s8 = scalar_select %p27_p1, %s1968_s20, %s29_s6  }
  0x2c   : > { %p38_p8 = por %p37_p4, %p36_p2  ;;  %p2735_p10 = scmp.eq.s32.totalorder %s2032_s22, 1 }
  0x2d   : > { %s198_s29 = sand.u32 1, %s1968_s20   ;;  %s1415_s10 = sshll.u32 %s1972_s21, 11 }
  0x2e   : > { %p2105_p12 = por %p2735_p10, %p36_p2  ;;  %s1360_s11 = sshll.u32 %s198_s29, 7 }
  0x2f   : > { %s2114_s14 = scalar_lea.hbm %s2722_s0, %s1415_s10  ;;  %s202_s28 = scalar_lea.vmem [#allocation2], %s1360_s11 }
  0x30   : > { %s209_s6 = sshll.u32 %s202_s28, 4  ;;  %p2116_p11 = pnand %p1732_p6, %p38_p8  ;;  %s2120_s6 = int_to_ptr.vmem [resolvable:$true] %s209_s6 }
  0x31   : > { %s2122_s15 = scalar_lea.sflag [#allocation3], %s198_s29  ;;  %s1872_s23 = scalar_lea.hbm %s2114_s14, 2048 }
  0x32   : > { %p1873_p13 = scmp.ne.s32.totalorder %s2114_s14, %s1872_s23  ;;  %p1874_p0 = pneg %p2116_p11 }
  0x33   : > { %s1877_s11 = scalar_lea.hbm %s2722_s0, 4096  ;;  %p1878_p7 = scmp.lt.u32.totalorder %s2114_s14, %s2722_s0 }
  0x34   : > { %p1875_p3 = pnand %p1874_p0, %p1873_p13  ;;  %p1879_p9 = scmp.lt.u32.totalorder %s1877_s11, %s1872_s23 }
  0x35   : > { %p1881_p2 = scmp.lt.u32.totalorder %s1872_s23, %s2114_s14 }
  0x36   : > { %p1876_p5 = pneg %p1875_p3  ;;  %p1880_p1 = por %p1879_p9, %p1878_p7 }
  0x38   : > { %p1882_p4 = por %p1881_p2, %p1880_p1 }
  0x3a   : > { %p1883_p6 = pnand %p1882_p4, %p1876_p5 }
  0x3c   : > { %1886 = shalt.err (!%p1883_p6)
}
  0x3d   : > { %s1887_s29 = scalar_lea.vmem %s2120_s6, 2048  ;;  %s1977_s28 = smov [#allocation2]  }
  0x3e   : > { %p1888_p8 = scmp.ne.s32.totalorder %s2120_s6, %s1887_s29  ;;  %s1892_s27 = sshll.u32 %s1977_s28, 4  ;;  %s1893_s27 = int_to_ptr.vmem [resolvable:$false] %s1892_s27 }
  0x3f   : > { %s1894_s10 = scalar_lea.vmem %s1893_s27, 4096  ;;  %p1895_p3 = scmp.lt.s32.totalorder %s2120_s6, %s1893_s27 }
  0x40   : > { %p1890_p10 = pnand %p1888_p8, %p1874_p0  ;;  %p1896_p7 = scmp.lt.s32.totalorder %s1894_s10, %s1887_s29 }
  0x42   : > { %p1891_p13 = pneg %p1890_p10  ;;  %p1897_p9 = por %p1896_p7, %p1895_p3 }
  0x44   : > { %p1898_p1 = pnand %p1897_p9, %p1891_p13 }
  0x46   : > { %1901 = shalt.err (!%p1898_p1)
}
  0x47   : > { %1726 = dma.hbm_to_vmem [thread:$0]  (!%p2116_p11), %s2114_s14, 2048, %s2120_s6, %s2122_s15, %s1975_s16, %s1975_s16, %s1976_s17  }
  0x48   : > { %p2738_p0 = scmp.ne.s32.totalorder %s2733_s26, 0 }
  0x49   : > { %s2156_s23 = sand.u32 (!%p2738_p0), 1, %s1964_s19   ;;  %p2739_p5 = scmp.ne.s32.totalorder (!%p2738_p0), %s2731_s24, 0 }
  0x4a   : > { %221 = sbr.rel (%p2738_p0) target bundleno = 616 (0x268), region = 40  ;;  %s1364_s11 = sshll.u32 (!%p2738_p0), %s2156_s23, 7 }
  0x4b   : > { %s224_s12 = scalar_lea.sflag (!%p2738_p0), [#allocation3], %s2156_s23  ;;  %s2162_s7 = scalar_lea.vmem (!%p2738_p0), [#allocation2], %s1364_s11 }
  0x51   : > { %1947 = dma.done.wait (%p2739_p5), %s224_s12, 2048  }
  0x52   : > { %1949 = vsyncadd (%p2739_p5), %s224_s12, 4294965248  ;;  %p2740_p11 = scmp.eq.s32.totalorder %s2032_s22, 0 }
  0x54   : > { %1951 = dma.done.wait (%p2740_p11), [#allocation6], 1024   ;;  %p2741_p2 = pmov %p2740_p11 }
  0x55   : > { %v1600_v0 = vld [vmem:[%s2162_s7 + $0x40] sm:$0xff]   ;;  %v1593_v6 = vld [vmem:[%s2162_s7 + $0x8] sm:$0xff]   ;;  %v1594_v20 = vld [vmem:[%s2162_s7 + $0x10] sm:$0xff]   ;;  %s2625_s15 = scalar_lea.vmem [#allocation7], %s1364_s11  ;;  %s1448_s13 = sshll.u32 %s2032_s22, 11 }
  0x56   : > { %1953 = vsyncadd (%p2741_p2), [#allocation6], 4294966272  ;;  %v1450_v1 = vld [vmem:[%s2162_s7] sm:$0xff]   ;;  %v2174_v2 = vunpack.c.l.bf16 %v1600_v0  ;;  %v2180_v4 = vunpack.c.h.bf16 %v1600_v0  ;;  %v1601_v7 = vld [vmem:[%s2162_s7 + $0x48] sm:$0xff]   ;;  %v2188_v8 = vunpack.c.h.bf16 %v1593_v6  ;;  %v2190_v9 = vunpack.c.l.bf16 %v1593_v6  ;;  %s1273_s29 = sshll.u32 %s2625_s15, 4  ;;  %s2674_s10 = scalar_lea.hbm %s2727_s5, %s1448_s13  ;;  %s2676_s29 = int_to_ptr.vmem [resolvable:$true] %s1273_s29 }
  0x57   : > { %v2176_v3 = vunpack.c.l.bf16 %v1450_v1  ;;  %v2182_v5 = vunpack.c.h.bf16 %v1450_v1  ;;  %v2194_v10 = vunpack.c.h.bf16 %v1601_v7  ;;  %v2196_v11 = vunpack.c.l.bf16 %v1601_v7  ;;  %v1602_v23 = vld [vmem:[%s2162_s7 + $0x50] sm:$0xff]   ;;  %v1772_v26 = vld [vmem:[#allocation5] sm:$0xff]   ;;  %v1595_v27 = vld [vmem:[%s2162_s7 + $0x18] sm:$0xff]   ;;  %s1260_s22 = scalar_lea.sflag [#allocation4], %s2156_s23  ;;  %s1902_s11 = scalar_lea.vmem %s2676_s29, 2048 }
  0x58   : > { %357 = vadd.xlane.f32.xlu1 %v2174_v2  ;;  %v406_v14 = vmul.f32 %v2180_v4, %v2180_v4  ;;  %v405_v15 = vmul.f32 %v2174_v2, %v2174_v2  ;;  %v392_v16 = vmul.f32 %v2188_v8, %v2188_v8  ;;  %v391_v17 = vmul.f32 %v2190_v9, %v2190_v9  ;;  %v1773_v30 = vld [vmem:[#allocation5 + $0x8] sm:$0xff]   ;;  %v1603_v31 = vld [vmem:[%s2162_s7 + $0x58] sm:$0xff]   ;;  %v1774_v34 = vld [vmem:[#allocation5 + $0x10] sm:$0xff]   ;;  %p1903_p4 = scmp.ne.s32.totalorder %s2676_s29, %s1902_s11  ;;  %s1978_s12 = smov [#allocation7]  }
  0x59   : > { %325 = vadd.xlane.f32.xlu0 %v2176_v3  ;;  %v390_v12 = vmul.f32 %v2182_v5, %v2182_v5  ;;  %v389_v13 = vmul.f32 %v2176_v3, %v2176_v3  ;;  %v408_v18 = vmul.f32 %v2194_v10, %v2194_v10  ;;  %v407_v19 = vmul.f32 %v2196_v11, %v2196_v11  ;;  %v1775_v37 = vld [vmem:[#allocation5 + $0x18] sm:$0xff]   ;;  %v1776_v40 = vld [vmem:[#allocation5 + $0x20] sm:$0xff]   ;;  %v1777_v43 = vld [vmem:[#allocation5 + $0x28] sm:$0xff]  }
  0x5a   : > { %v2217_v21 = vunpack.c.h.bf16 %v1594_v20  ;;  %v2219_v22 = vunpack.c.l.bf16 %v1594_v20  ;;  %v2224_v24 = vunpack.c.h.bf16 %v1602_v23  ;;  %v2226_v25 = vunpack.c.l.bf16 %v1602_v23  ;;  %1647 = vmatprep.subr.bf16.mxu0 %v1772_v26  ;;  %1695 = vmatprep.subr.bf16.mxu1 %v1772_v26  ;;  %v1778_v46 = vld [vmem:[#allocation5 + $0x30] sm:$0xff]   ;;  %v1596_v47 = vld [vmem:[%s2162_s7 + $0x20] sm:$0xff]   ;;  %v1779_v50 = vld [vmem:[#allocation5 + $0x38] sm:$0xff]   ;;  %p1904_p6 = pnand %p1903_p4, %p2105_p12 }
  0x5b   : > { %1648 = vmatpush3.bf16.msra.mxu0 %v1772_v26  ;;  %1703 = vmatpush3.bf16.msra.mxu1 %v1772_v26  ;;  %v2231_v28 = vunpack.c.h.bf16 %v1595_v27  ;;  %v2233_v29 = vunpack.c.l.bf16 %v1595_v27  ;;  %v2238_v32 = vunpack.c.h.bf16 %v1603_v31  ;;  %v2240_v33 = vunpack.c.l.bf16 %v1603_v31  ;;  %v1604_v51 = vld [vmem:[%s2162_s7 + $0x60] sm:$0xff]   ;;  %v1597_v54 = vld [vmem:[%s2162_s7 + $0x28] sm:$0xff]   ;;  %v1607_v23 = vld [vmem:[%s2162_s7 + $0x78] sm:$0xff]  }
  0x5c   : > { %359 = vadd.xlane.f32.xlu1 %v2180_v4  ;;  %1649 = vmatprep.subr.bf16.mxu0 %v1773_v30  ;;  %v394_v35 = vmul.f32 %v2217_v21, %v2217_v21  ;;  %v393_v36 = vmul.f32 %v2219_v22, %v2219_v22  ;;  %v410_v38 = vmul.f32 %v2224_v24, %v2224_v24  ;;  %v2261_v48 = vunpack.c.h.bf16 %v1596_v47  ;;  %v1605_v57 = vld [vmem:[%s2162_s7 + $0x68] sm:$0xff]   ;;  %p1905_p8 = pneg %p1904_p6 }
  0x5d   : > { %327 = vadd.xlane.f32.xlu0 %v2182_v5  ;;  %1696 = vmatprep.subr.bf16.mxu1 %v1773_v30  ;;  %v409_v39 = vmul.f32 %v2226_v25, %v2226_v25  ;;  %v396_v41 = vmul.f32 %v2231_v28, %v2231_v28  ;;  %v395_v42 = vmul.f32 %v2233_v29, %v2233_v29  ;;  %v2263_v49 = vunpack.c.l.bf16 %v1596_v47 }
  0x5e   : > { %v412_v44 = vmul.f32 %v2238_v32, %v2238_v32  ;;  %v411_v45 = vmul.f32 %v2240_v33, %v2240_v33  ;;  %v2268_v52 = vunpack.c.h.bf16 %v1604_v51  ;;  %v2270_v53 = vunpack.c.l.bf16 %v1604_v51 }
  0x5f   : > { %1650 = vmatpush3.bf16.msra.mxu0 %v1773_v30  ;;  %1704 = vmatpush3.bf16.msra.mxu1 %v1773_v30  ;;  %v2275_v55 = vunpack.c.h.bf16 %v1597_v54  ;;  %v2277_v56 = vunpack.c.l.bf16 %v1597_v54  ;;  %v2282_v58 = vunpack.c.h.bf16 %v1605_v57  ;;  %v2284_v59 = vunpack.c.l.bf16 %v1605_v57 }
  0x60   : > { %331 = vadd.xlane.f32.xlu1 %v2188_v8  ;;  %1651 = vmatprep.subr.bf16.mxu0 %v1774_v34  ;;  %v398_v60 = vmul.f32 %v2261_v48, %v2261_v48  ;;  %v397_v61 = vmul.f32 %v2263_v49, %v2263_v49  ;;  %v414_v62 = vmul.f32 %v2268_v52, %v2268_v52  ;;  %v2326_v26 = vunpack.c.h.bf16 %v1607_v23 }
  0x61   : > { %329 = vadd.xlane.f32.xlu0 %v2190_v9  ;;  %1697 = vmatprep.subr.bf16.mxu1 %v1774_v34  ;;  %v413_v63 = vmul.f32 %v2270_v53, %v2270_v53  ;;  %v400_v0 = vmul.f32 %v2275_v55, %v2275_v55  ;;  %v399_v1 = vmul.f32 %v2277_v56, %v2277_v56  ;;  %v2328_v27 = vunpack.c.l.bf16 %v1607_v23 }
  0x62   : > { %v416_v6 = vmul.f32 %v2282_v58, %v2282_v58  ;;  %v415_v7 = vmul.f32 %v2284_v59, %v2284_v59 }
  0x63   : > { %1652 = vmatpush3.bf16.msra.mxu0 %v1774_v34  ;;  %1705 = vmatpush3.bf16.msra.mxu1 %v1774_v34 }
  0x64   : > { %363 = vadd.xlane.f32.xlu1 %v2194_v10  ;;  %1653 = vmatprep.subr.bf16.mxu0 %v1775_v37 }
  0x65   : > { %361 = vadd.xlane.f32.xlu0 %v2196_v11  ;;  %1698 = vmatprep.subr.bf16.mxu1 %v1775_v37 }
  0x67   : > { %1654 = vmatpush3.bf16.msra.mxu0 %v1775_v37  ;;  %1706 = vmatpush3.bf16.msra.mxu1 %v1775_v37 }
  0x68   : > { %423 = vadd.xlane.f32.xlu1 %v390_v12  ;;  %1655 = vmatprep.subr.bf16.mxu0 %v1776_v40  ;;  %v1598_v12 = vld [vmem:[%s2162_s7 + $0x30] sm:$0xff]  }
  0x69   : > { %421 = vadd.xlane.f32.xlu0 %v389_v13  ;;  %1699 = vmatprep.subr.bf16.mxu1 %v1776_v40  ;;  %v2305_v13 = vunpack.c.h.bf16 %v1598_v12 }
  0x6b   : > { %1656 = vmatpush3.bf16.msra.mxu0 %v1776_v40  ;;  %1707 = vmatpush3.bf16.msra.mxu1 %v1776_v40  ;;  %v402_v30 = vmul.f32 %v2305_v13, %v2305_v13 }
  0x6c   : > { %455 = vadd.xlane.f32.xlu1 %v406_v14  ;;  %1657 = vmatprep.subr.bf16.mxu0 %v1777_v43  ;;  %v2307_v14 = vunpack.c.l.bf16 %v1598_v12 }
  0x6d   : > { %453 = vadd.xlane.f32.xlu0 %v405_v15  ;;  %1700 = vmatprep.subr.bf16.mxu1 %v1777_v43  ;;  %v1606_v15 = vld [vmem:[%s2162_s7 + $0x70] sm:$0xff]  }
  0x6e   : > { %v401_v31 = vmul.f32 %v2307_v14, %v2307_v14 }
  0x6f   : > { %1658 = vmatpush3.bf16.msra.mxu0 %v1777_v43  ;;  %1708 = vmatpush3.bf16.msra.mxu1 %v1777_v43 }
  0x70   : > { %427 = vadd.xlane.f32.xlu1 %v392_v16  ;;  %1659 = vmatprep.subr.bf16.mxu0 %v1778_v46  ;;  %v2312_v16 = vunpack.c.h.bf16 %v1606_v15 }
  0x71   : > { %425 = vadd.xlane.f32.xlu0 %v391_v17  ;;  %1701 = vmatprep.subr.bf16.mxu1 %v1778_v46  ;;  %v2314_v17 = vunpack.c.l.bf16 %v1606_v15 }
  0x72   : > { %v418_v34 = vmul.f32 %v2312_v16, %v2312_v16 }
  0x73   : > { %1660 = vmatpush3.bf16.msra.mxu0 %v1778_v46  ;;  %1709 = vmatpush3.bf16.msra.mxu1 %v1778_v46 }
  0x74   : > { %459 = vadd.xlane.f32.xlu1 %v408_v18  ;;  %1661 = vmatprep.subr.bf16.mxu0 %v1779_v50  ;;  %v1599_v18 = vld [vmem:[%s2162_s7 + $0x38] sm:$0xff]   ;;  %s1906_s7 = sshll.u32 %s1978_s12, 4  ;;  %s1907_s7 = int_to_ptr.vmem [resolvable:$false] %s1906_s7 }
  0x75   : > { %457 = vadd.xlane.f32.xlu0 %v407_v19  ;;  %1702 = vmatprep.subr.bf16.mxu1 %v1779_v50  ;;  %v2319_v19 = vunpack.c.h.bf16 %v1599_v18  ;;  %v2321_v20 = vunpack.c.l.bf16 %v1599_v18  ;;  %s1908_s24 = scalar_lea.vmem %s1907_s7, 4096  ;;  %p1909_p10 = scmp.lt.s32.totalorder %s2676_s29, %s1907_s7 }
  0x76   : > { %p1910_p13 = scmp.lt.s32.totalorder %s1908_s24, %s1902_s11 }
  0x77   : > { %1662 = vmatpush3.bf16.msra.mxu0 %v1779_v50  ;;  %1710 = vmatpush3.bf16.msra.mxu1 %v1779_v50  ;;  %v403_v37 = vmul.f32 %v2321_v20, %v2321_v20 }
  0x78   : > { %335 = vadd.xlane.f32.xlu1 %v2217_v21  ;;  %p1911_p3 = por %p1910_p13, %p1909_p10 }
  0x79   : > { %333 = vadd.xlane.f32.xlu0 %v2219_v22 }
  0x7a   : > { %p1912_p7 = pnand %p1911_p3, %p1905_p8 }
  0x7c   : > { %367 = vadd.xlane.f32.xlu1 %v2224_v24 }
  0x7d   : > { %365 = vadd.xlane.f32.xlu0 %v2226_v25 }
  0x80   : > { %339 = vadd.xlane.f32.xlu1 %v2231_v28 }
  0x81   : > { %337 = vadd.xlane.f32.xlu0 %v2233_v29 }
  0x84   : > { %371 = vadd.xlane.f32.xlu1 %v2238_v32 }
  0x85   : > { %369 = vadd.xlane.f32.xlu0 %v2240_v33 }
  0x88   : > { %431 = vadd.xlane.f32.xlu1 %v394_v35  ;;  %v417_v35 = vmul.f32 %v2314_v17, %v2314_v17 }
  0x89   : > { %429 = vadd.xlane.f32.xlu0 %v393_v36  ;;  %v404_v36 = vmul.f32 %v2319_v19, %v2319_v19 }
  0x8c   : > { %463 = vadd.xlane.f32.xlu1 %v410_v38  ;;  %v420_v38 = vmul.f32 %v2326_v26, %v2326_v26 }
  0x8d   : > { %461 = vadd.xlane.f32.xlu0 %v409_v39  ;;  %v419_v39 = vmul.f32 %v2328_v27, %v2328_v27 }
  0x90   : > { %435 = vadd.xlane.f32.xlu1 %v396_v41 }
  0x91   : > { %433 = vadd.xlane.f32.xlu0 %v395_v42 }
  0x94   : > { %467 = vadd.xlane.f32.xlu1 %v412_v44 }
  0x95   : > { %465 = vadd.xlane.f32.xlu0 %v411_v45 }
  0x98   : > { %343 = vadd.xlane.f32.xlu1 %v2261_v48 }
  0x99   : > { %341 = vadd.xlane.f32.xlu0 %v2263_v49 }
  0x9c   : > { %375 = vadd.xlane.f32.xlu1 %v2268_v52 }
  0x9d   : > { %373 = vadd.xlane.f32.xlu0 %v2270_v53 }
  0xa0   : > { %347 = vadd.xlane.f32.xlu1 %v2275_v55 }
  0xa1   : > { %345 = vadd.xlane.f32.xlu0 %v2277_v56 }
  0xa4   : > { %379 = vadd.xlane.f32.xlu1 %v2282_v58 }
  0xa5   : > { %377 = vadd.xlane.f32.xlu0 %v2284_v59 }
  0xa8   : > { %439 = vadd.xlane.f32.xlu1 %v398_v60 }
  0xa9   : > { %437 = vadd.xlane.f32.xlu0 %v397_v61 }
  0xac   : > { %471 = vadd.xlane.f32.xlu1 %v414_v62 }
  0xad   : > { %469 = vadd.xlane.f32.xlu0 %v413_v63 }
  0xb0   : > { %443 = vadd.xlane.f32.xlu1 %v400_v0 }
  0xb1   : > { %441 = vadd.xlane.f32.xlu0 %v399_v1 }
  0xb4   : > { %475 = vadd.xlane.f32.xlu1 %v416_v6 }
  0xb5   : > { %473 = vadd.xlane.f32.xlu0 %v415_v7 }
  0xb8   : > { %351 = vadd.xlane.f32.xlu1 %v2305_v13 }
  0xb9   : > { %349 = vadd.xlane.f32.xlu0 %v2307_v14 }
  0xbc   : > { %383 = vadd.xlane.f32.xlu1 %v2312_v16 }
  0xbd   : > { %381 = vadd.xlane.f32.xlu0 %v2314_v17 }
  0xc0   : > { %355 = vadd.xlane.f32.xlu1 %v2319_v19 }
  0xc1   : > { %353 = vadd.xlane.f32.xlu0 %v2321_v20 }
  0xc4   : > { %387 = vadd.xlane.f32.xlu1 %v2326_v26 }
  0xc5   : > { %385 = vadd.xlane.f32.xlu0 %v2328_v27 }
  0xc8   : > { %447 = vadd.xlane.f32.xlu1 %v402_v30 }
  0xc9   : > { %445 = vadd.xlane.f32.xlu0 %v401_v31 }
  0xcc   : > { %479 = vadd.xlane.f32.xlu1 %v418_v34 }
  0xcd   : > { %477 = vadd.xlane.f32.xlu0 %v417_v35 }
  0xd0   : > { %451 = vadd.xlane.f32.xlu1 %v404_v36 }
  0xd1   : > { %449 = vadd.xlane.f32.xlu0 %v403_v37 }
  0xd4   : > { %483 = vadd.xlane.f32.xlu1 %v420_v38 }
  0xd5   : > { %481 = vadd.xlane.f32.xlu0 %v419_v39 }
  0xe5   : > { %v358_v40 = vpop.xlane.xlu1 %357 }
  0xe6   : > { %v326_v41 = vpop.xlane.xlu0 %325  ;;  %v2352_v54 = vmul.f32 0.0078125, %v358_v40 }
  0xe7   : > { %v2348_v50 = vmul.f32 0.0078125, %v326_v41 }
  0xe8   : > { %v565_v12 = vmul.f32 %v2352_v54, %v2352_v54 }
  0xe9   : > { %v360_v42 = vpop.xlane.xlu1 %359  ;;  %v549_v62 = vmul.f32 %v2348_v50, %v2348_v50 }
  0xea   : > { %v328_v43 = vpop.xlane.xlu0 %327  ;;  %v2354_v57 = vmul.f32 0.0078125, %v360_v42 }
  0xeb   : > { %v2350_v51 = vmul.f32 0.0078125, %v328_v43 }
  0xec   : > { %v566_v15 = vmul.f32 %v2354_v57, %v2354_v57 }
  0xed   : > { %v332_v44 = vpop.xlane.xlu1 %331  ;;  %v550_v63 = vmul.f32 %v2350_v51, %v2350_v51 }
  0xee   : > { %v330_v45 = vpop.xlane.xlu0 %329  ;;  %v2364_v18 = vmul.f32 0.0078125, %v332_v44 }
  0xef   : > { %v2366_v37 = vmul.f32 0.0078125, %v330_v45 }
  0xf0   : > { %v552_v42 = vmul.f32 %v2364_v18, %v2364_v18 }
  0xf1   : > { %v364_v46 = vpop.xlane.xlu1 %363  ;;  %v551_v45 = vmul.f32 %v2366_v37, %v2366_v37 }
  0xf2   : > { %v362_v47 = vpop.xlane.xlu0 %361  ;;  %v2370_v43 = vmul.f32 0.0078125, %v364_v46 }
  0xf4   : > { %v568_v46 = vmul.f32 %v2370_v43, %v2370_v43 }
  0xf5   : > { %v424_v60 = vpop.xlane.xlu1 %423 }
  0xf6   : > { %v422_v61 = vpop.xlane.xlu0 %421  ;;  %v518_v0 = vmul.f32 0.0078125, %v424_v60  ;;  %v2372_v60 = vmul.f32 0.0078125, %v362_v47 }
  0xf7   : > { %v517_v1 = vmul.f32 0.0078125, %v422_v61 }
  0xf8   : > { %v582_v6 = vsub.f32 %v518_v0, %v550_v63  ;;  %v567_v47 = vmul.f32 %v2372_v60, %v2372_v60 }
  0xf9   : > { %v581_v7 = vsub.f32 %v517_v1, %v549_v62  ;;  %v456_v23 = vpop.xlane.xlu1 %455 }
  0xfa   : > { %v454_v30 = vpop.xlane.xlu0 %453  ;;  %v614_v31 = vmax.f32 %v582_v6, 0.0  ;;  %v534_v35 = vmul.f32 0.0078125, %v456_v23 }
  0xfb   : > { %v613_v34 = vmax.f32 %v581_v7, 0.0  ;;  %v533_v36 = vmul.f32 0.0078125, %v454_v30 }
  0xfc   : > { %v646_v38 = vadd.f32 1e-05, %v614_v31  ;;  %v598_v40 = vsub.f32 %v534_v35, %v566_v15 }
  0xfd   : > { %v645_v39 = vadd.f32 1e-05, %v613_v34  ;;  %v597_v41 = vsub.f32 %v533_v36, %v565_v12  ;;  %v428_v44 = vpop.xlane.xlu1 %427 }
  0xfe   : > { %v426_v61 = vpop.xlane.xlu0 %425  ;;  %1780 = vrsqrt.f32 %v646_v38  ;;  %v630_v62 = vmax.f32 %v598_v40, 0.0  ;;  %v520_v0 = vmul.f32 0.0078125, %v428_v44 }
  0xff   : > { %v629_v63 = vmax.f32 %v597_v41, 0.0  ;;  %1782 = vrsqrt.f32 %v645_v39  ;;  %v519_v1 = vmul.f32 0.0078125, %v426_v61 }
 0x100   : > { %v662_v6 = vadd.f32 1e-05, %v630_v62  ;;  %v584_v12 = vsub.f32 %v520_v0, %v552_v42 }
 0x101   : > { %v661_v7 = vadd.f32 1e-05, %v629_v63  ;;  %v583_v15 = vsub.f32 %v519_v1, %v551_v45  ;;  %v460_v23 = vpop.xlane.xlu1 %459  ;;  %v710_v63 = vsub.f32 %v2182_v5, %v2350_v51  ;;  %v709_v45 = vsub.f32 %v2176_v3, %v2348_v50  ;;  %v2392_v5 = vld [vmem:[%s2724_s2] ss:$0 sm:$0xff] }
 0x102   : > { %v458_v30 = vpop.xlane.xlu0 %457  ;;  %1784 = vrsqrt.f32 %v662_v6  ;;  %v616_v31 = vmax.f32 %v584_v12, 0.0  ;;  %v536_v34 = vmul.f32 0.0078125, %v460_v23  ;;  %v726_v3 = vsub.f32 %v2180_v4, %v2354_v57 }
 0x103   : > { %v535_v35 = vmul.f32 0.0078125, %v458_v30  ;;  %1786 = vrsqrt.f32 %v661_v7  ;;  %v615_v36 = vmax.f32 %v583_v15, 0.0  ;;  %v2387_v7 = vld [vmem:[%s2723_s1] ss:$0 sm:$0xff]  ;;  %v725_v30 = vsub.f32 %v2174_v2, %v2352_v54 }
 0x104   : > { %v648_v38 = vadd.f32 1e-05, %v616_v31  ;;  %v600_v39 = vsub.f32 %v536_v34, %v568_v46  ;;  %v711_v2 = vsub.f32 %v2190_v9, %v2366_v37 }
 0x105   : > { %v599_v40 = vsub.f32 %v535_v35, %v567_v47  ;;  %v647_v41 = vadd.f32 1e-05, %v615_v36  ;;  %v336_v42 = vpop.xlane.xlu1 %335 }
 0x106   : > { %v334_v44 = vpop.xlane.xlu0 %333  ;;  %1788 = vrsqrt.f32 %v648_v38  ;;  %v632_v61 = vmax.f32 %v600_v39, 0.0  ;;  %v2407_v54 = vmul.f32 0.0078125, %v336_v42 }
 0x107   : > { %v631_v62 = vmax.f32 %v599_v40, 0.0  ;;  %1790 = vrsqrt.f32 %v647_v41  ;;  %v712_v41 = vsub.f32 %v2188_v8, %v2364_v18  ;;  %v2411_v8 = vmul.f32 0.0078125, %v334_v44 }
 0x108   : > { %v1781_v0 = vpop.eup %1780  ;;  %v664_v1 = vadd.f32 1e-05, %v632_v61 }
 0x109   : > { %v663_v6 = vadd.f32 1e-05, %v631_v62  ;;  %v1783_v12 = vpop.eup %1782  ;;  %v368_v46 = vpop.xlane.xlu1 %367  ;;  %v742_v15 = vmul.f32 %v1781_v0, %v710_v63 }
 0x10a   : > { %v366_v47 = vpop.xlane.xlu0 %365  ;;  %1792 = vrsqrt.f32 %v664_v1  ;;  %v741_v23 = vmul.f32 %v1783_v12, %v709_v45 }
 0x10b   : > { %1794 = vrsqrt.f32 %v663_v6  ;;  %v781_v50 = vmul.f32 %v2387_v7, %v742_v15  ;;  %v728_v15 = vsub.f32 %v2194_v10, %v2370_v43  ;;  %v2423_v44 = vmul.f32 0.0078125, %v366_v47 }
 0x10c   : > { %v1785_v51 = vpop.eup %1784  ;;  %v780_v36 = vmul.f32 %v2387_v7, %v741_v23  ;;  %v727_v23 = vsub.f32 %v2196_v11, %v2372_v60 }
 0x10d   : > { %v1787_v31 = vpop.eup %1786  ;;  %v340_v34 = vpop.xlane.xlu1 %339  ;;  %v820_v38 = vadd.f32 %v2392_v5, %v781_v50  ;;  %v758_v39 = vmul.f32 %v1785_v51, %v726_v3  ;;  %v554_v3 = vmul.f32 %v2407_v54, %v2407_v54  ;;  %v2421_v50 = vmul.f32 0.0078125, %v368_v46 }
 0x10e   : > { %v338_v35 = vpop.xlane.xlu0 %337  ;;  %v757_v40 = vmul.f32 %v1787_v31, %v725_v30  ;;  %v819_v4 = vadd.f32 %v2392_v5, %v780_v36 }
 0x10f   : > { %v797_v57 = vmul.f32 %v2387_v7, %v758_v39  ;;  %v553_v39 = vmul.f32 %v2411_v8, %v2411_v8 }
 0x110   : > { %v1789_v61 = vpop.eup %1788  ;;  %v851_v0 = vpack.c.bf16 %v820_v38, %v819_v4  ;;  %v796_v1 = vmul.f32 %v2387_v7, %v757_v40 }
 0x111   : > { %v1791_v62 = vpop.eup %1790  ;;  %v372_v63 = vpop.xlane.xlu1 %371  ;;  %v836_v6 = vadd.f32 %v2392_v5, %v797_v57  ;;  %v744_v12 = vmul.f32 %v1789_v61, %v712_v41  ;;  %v570_v41 = vmul.f32 %v2421_v50, %v2421_v50 }
 0x112   : > { %v370_v45 = vpop.xlane.xlu0 %369  ;;  %v743_v18 = vmul.f32 %v1791_v62, %v711_v2  ;;  %1663 = vmatprep.mubr.bf16.mxu0 %v851_v0  ;;  %v835_v9 = vadd.f32 %v2392_v5, %v796_v1  ;;  %v569_v2 = vmul.f32 %v2423_v44, %v2423_v44  ;;  %v2436_v62 = vmul.f32 0.0078125, %v340_v34 }
 0x113   : > { %v783_v37 = vmul.f32 %v2387_v7, %v744_v12 }
 0x114   : > { %v1793_v42 = vpop.eup %1792  ;;  %v859_v31 = vpack.c.bf16 %v836_v6, %v835_v9  ;;  %v782_v43 = vmul.f32 %v2387_v7, %v743_v18  ;;  %v556_v34 = vmul.f32 %v2436_v62, %v2436_v62 }
 0x115   : > { %v1795_v51 = vpop.eup %1794  ;;  %v432_v30 = vpop.xlane.xlu1 %431  ;;  %v822_v36 = vadd.f32 %v2392_v5, %v783_v37  ;;  %v760_v38 = vmul.f32 %v1793_v42, %v728_v15  ;;  %v2439_v42 = vmul.f32 0.0078125, %v338_v35 }
 0x116   : > { %v430_v10 = vpop.xlane.xlu0 %429  ;;  %v522_v11 = vmul.f32 0.0078125, %v432_v30  ;;  %v759_v40 = vmul.f32 %v1795_v51, %v727_v23  ;;  %1679 = vmatprep.mubr.bf16.mxu1 %v859_v31  ;;  %v821_v46 = vadd.f32 %v2392_v5, %v782_v43  ;;  %v2446_v43 = vmul.f32 0.0078125, %v370_v45 }
 0x117   : > { %v521_v60 = vmul.f32 0.0078125, %v430_v10  ;;  %v799_v47 = vmul.f32 %v2387_v7, %v760_v38  ;;  %v2444_v10 = vmul.f32 0.0078125, %v372_v63 }
 0x118   : > { %v586_v4 = vsub.f32 %v522_v11, %v554_v3  ;;  %v798_v61 = vmul.f32 %v2387_v7, %v759_v40  ;;  %v852_v1 = vpack.c.bf16 %v822_v36, %v821_v46  ;;  %v555_v40 = vmul.f32 %v2439_v42, %v2439_v42 }
 0x119   : > { %v585_v57 = vsub.f32 %v521_v60, %v553_v39  ;;  %v464_v0 = vpop.xlane.xlu1 %463  ;;  %v838_v12 = vadd.f32 %v2392_v5, %v799_v47  ;;  %v572_v63 = vmul.f32 %v2444_v10, %v2444_v10  ;;  %v571_v45 = vmul.f32 %v2446_v43, %v2446_v43 }
 0x11a   : > { %v462_v6 = vpop.xlane.xlu0 %461  ;;  %v618_v18 = vmax.f32 %v586_v4, 0.0  ;;  %v538_v9 = vmul.f32 0.0078125, %v464_v0  ;;  %1664 = vmatmul.mubr.bf16.vlgmr.msra.gmra.mrb[0].mxu0 %v852_v1  ;;  %v837_v23 = vadd.f32 %v2392_v5, %v798_v61 }
 0x11b   : > { %v617_v15 = vmax.f32 %v585_v57, 0.0  ;;  %v537_v37 = vmul.f32 0.0078125, %v462_v6 }
 0x11c   : > { %v650_v3 = vadd.f32 1e-05, %v618_v18  ;;  %v602_v30 = vsub.f32 %v538_v9, %v570_v41  ;;  %v860_v38 = vpack.c.bf16 %v838_v12, %v837_v23 }
 0x11d   : > { %v649_v51 = vadd.f32 1e-05, %v617_v15  ;;  %v601_v31 = vsub.f32 %v537_v37, %v569_v2  ;;  %v436_v36 = vpop.xlane.xlu1 %435 }
 0x11e   : > { %v434_v39 = vpop.xlane.xlu0 %433  ;;  %1796 = vrsqrt.f32 %v650_v3  ;;  %v634_v35 = vmax.f32 %v602_v30, 0.0  ;;  %v524_v60 = vmul.f32 0.0078125, %v436_v36  ;;  %1680 = vmatmul.mubr.bf16.vlgmr.msra.gmra.mrb[0].mxu1 %v860_v38  ;;  %v713_v36 = vsub.f32 %v2219_v22, %v2411_v8 }
 0x11f   : > { %v633_v11 = vmax.f32 %v601_v31, 0.0  ;;  %1798 = vrsqrt.f32 %v649_v51  ;;  %v523_v46 = vmul.f32 0.0078125, %v434_v39  ;;  %v714_v31 = vsub.f32 %v2217_v21, %v2407_v54 }
 0x120   : > { %v666_v47 = vadd.f32 1e-05, %v634_v35  ;;  %v588_v4 = vsub.f32 %v524_v60, %v556_v34  ;;  %v729_v54 = vsub.f32 %v2226_v25, %v2423_v44  ;;  %v715_v25 = vsub.f32 %v2233_v29, %v2439_v42 }
 0x121   : > { %v665_v41 = vadd.f32 1e-05, %v633_v11  ;;  %v587_v57 = vsub.f32 %v523_v46, %v555_v40  ;;  %v468_v61 = vpop.xlane.xlu1 %467 }
 0x122   : > { %v466_v2 = vpop.xlane.xlu0 %465  ;;  %1800 = vrsqrt.f32 %v666_v47  ;;  %v620_v0 = vmax.f32 %v588_v4, 0.0  ;;  %v540_v1 = vmul.f32 0.0078125, %v468_v61  ;;  %v730_v47 = vsub.f32 %v2224_v24, %v2421_v50 }
 0x123   : > { %v539_v6 = vmul.f32 0.0078125, %v466_v2  ;;  %1802 = vrsqrt.f32 %v665_v41  ;;  %v619_v12 = vmax.f32 %v587_v57, 0.0  ;;  %v716_v2 = vsub.f32 %v2231_v28, %v2436_v62 }
 0x124   : > { %v652_v18 = vadd.f32 1e-05, %v620_v0  ;;  %v604_v15 = vsub.f32 %v540_v1, %v572_v63 }
 0x125   : > { %v603_v9 = vsub.f32 %v539_v6, %v571_v45  ;;  %v651_v37 = vadd.f32 1e-05, %v619_v12  ;;  %v344_v23 = vpop.xlane.xlu1 %343 }
 0x126   : > { %v342_v3 = vpop.xlane.xlu0 %341  ;;  %1804 = vrsqrt.f32 %v652_v18  ;;  %v636_v51 = vmax.f32 %v604_v15, 0.0  ;;  %v2471_v44 = vmul.f32 0.0078125, %v344_v23 }
 0x127   : > { %v635_v30 = vmax.f32 %v603_v9, 0.0  ;;  %1806 = vrsqrt.f32 %v651_v37  ;;  %v2475_v28 = vmul.f32 0.0078125, %v342_v3 }
 0x128   : > { %v1797_v34 = vpop.eup %1796  ;;  %v668_v38 = vadd.f32 1e-05, %v636_v51  ;;  %v732_v51 = vsub.f32 %v2238_v32, %v2444_v10 }
 0x129   : > { %v667_v39 = vadd.f32 1e-05, %v635_v30  ;;  %v1799_v35 = vpop.eup %1798  ;;  %v376_v11 = vpop.xlane.xlu1 %375  ;;  %v746_v40 = vmul.f32 %v1797_v34, %v714_v31  ;;  %v731_v30 = vsub.f32 %v2240_v33, %v2446_v43  ;;  %v558_v31 = vmul.f32 %v2471_v44, %v2471_v44 }
 0x12a   : > { %v374_v60 = vpop.xlane.xlu0 %373  ;;  %1808 = vrsqrt.f32 %v668_v38  ;;  %v745_v46 = vmul.f32 %v1799_v35, %v713_v36  ;;  %v2485_v34 = vmul.f32 0.0078125, %v376_v11 }
 0x12b   : > { %1810 = vrsqrt.f32 %v667_v39  ;;  %v785_v41 = vmul.f32 %v2387_v7, %v746_v40  ;;  %v2487_v3 = vmul.f32 0.0078125, %v374_v60 }
 0x12c   : > { %v1801_v21 = vpop.eup %1800  ;;  %v784_v63 = vmul.f32 %v2387_v7, %v745_v46  ;;  %v557_v46 = vmul.f32 %v2475_v28, %v2475_v28 }
 0x12d   : > { %v1803_v4 = vpop.eup %1802  ;;  %v348_v22 = vpop.xlane.xlu1 %347  ;;  %v824_v45 = vadd.f32 %v2392_v5, %v785_v41  ;;  %v762_v57 = vmul.f32 %v1801_v21, %v730_v47  ;;  %v574_v41 = vmul.f32 %v2485_v34, %v2485_v34 }
 0x12e   : > { %v346_v8 = vpop.xlane.xlu0 %345  ;;  %v761_v61 = vmul.f32 %v1803_v4, %v729_v54  ;;  %v823_v24 = vadd.f32 %v2392_v5, %v784_v63  ;;  %v573_v63 = vmul.f32 %v2487_v3, %v2487_v3 }
 0x12f   : > { %v801_v50 = vmul.f32 %v2387_v7, %v762_v57 }
 0x130   : > { %v1805_v0 = vpop.eup %1804  ;;  %v853_v12 = vpack.c.bf16 %v824_v45, %v823_v24  ;;  %v800_v15 = vmul.f32 %v2387_v7, %v761_v61  ;;  %v2500_v45 = vmul.f32 0.0078125, %v348_v22 }
 0x131   : > { %v1807_v1 = vpop.eup %1806  ;;  %v380_v6 = vpop.xlane.xlu1 %379  ;;  %v840_v9 = vadd.f32 %v2392_v5, %v801_v50  ;;  %v748_v37 = vmul.f32 %v1805_v0, %v716_v2 }
 0x132   : > { %v378_v18 = vpop.xlane.xlu0 %377  ;;  %v747_v62 = vmul.f32 %v1807_v1, %v715_v25  ;;  %1667 = vmatprep.mubr.bf16.mxu0 %v853_v12  ;;  %v839_v29 = vadd.f32 %v2392_v5, %v800_v15  ;;  %v2503_v12 = vmul.f32 0.0078125, %v346_v8  ;;  %v560_v22 = vmul.f32 %v2500_v45, %v2500_v45 }
 0x133   : > { %v787_v42 = vmul.f32 %v2387_v7, %v748_v37 }
 0x134   : > { %v1809_v23 = vpop.eup %1808  ;;  %v861_v39 = vpack.c.bf16 %v840_v9, %v839_v29  ;;  %v786_v10 = vmul.f32 %v2387_v7, %v747_v62  ;;  %v2508_v29 = vmul.f32 0.0078125, %v380_v6 }
 0x135   : > { %v1811_v36 = vpop.eup %1810  ;;  %v440_v38 = vpop.xlane.xlu1 %439  ;;  %v826_v35 = vadd.f32 %v2392_v5, %v787_v42  ;;  %v764_v40 = vmul.f32 %v1809_v23, %v732_v51  ;;  %v2510_v42 = vmul.f32 0.0078125, %v378_v18 }
 0x136   : > { %v438_v32 = vpop.xlane.xlu0 %437  ;;  %v526_v33 = vmul.f32 0.0078125, %v440_v38  ;;  %v763_v47 = vmul.f32 %v1811_v36, %v731_v30  ;;  %1683 = vmatprep.mubr.bf16.mxu1 %v861_v39  ;;  %v825_v11 = vadd.f32 %v2392_v5, %v786_v10  ;;  %v559_v39 = vmul.f32 %v2503_v12, %v2503_v12 }
 0x137   : > { %v525_v43 = vmul.f32 0.0078125, %v438_v32  ;;  %v803_v60 = vmul.f32 %v2387_v7, %v764_v40  ;;  %v576_v6 = vmul.f32 %v2508_v29, %v2508_v29  ;;  %v575_v18 = vmul.f32 %v2510_v42, %v2510_v42 }
 0x138   : > { %v590_v21 = vsub.f32 %v526_v33, %v558_v31  ;;  %v802_v4 = vmul.f32 %v2387_v7, %v763_v47  ;;  %v854_v61 = vpack.c.bf16 %v826_v35, %v825_v11 }
 0x139   : > { %v589_v54 = vsub.f32 %v525_v43, %v557_v46  ;;  %v472_v57 = vpop.xlane.xlu1 %471  ;;  %v842_v24 = vadd.f32 %v2392_v5, %v803_v60 }
 0x13a   : > { %v470_v2 = vpop.xlane.xlu0 %469  ;;  %v622_v50 = vmax.f32 %v590_v21, 0.0  ;;  %v542_v25 = vmul.f32 0.0078125, %v472_v57  ;;  %1668 = vmatmul.mubr.bf16.gmra.mrb[4].mxu0 %v854_v61  ;;  %v841_v15 = vadd.f32 %v2392_v5, %v802_v4 }
 0x13b   : > { %v621_v0 = vmax.f32 %v589_v54, 0.0  ;;  %v541_v1 = vmul.f32 0.0078125, %v470_v2 }
 0x13c   : > { %v654_v9 = vadd.f32 1e-05, %v622_v50  ;;  %v606_v62 = vsub.f32 %v542_v25, %v574_v41  ;;  %v862_v30 = vpack.c.bf16 %v842_v24, %v841_v15  ;;  %v718_v50 = vsub.f32 %v2261_v48, %v2471_v44 }
 0x13d   : > { %v653_v37 = vadd.f32 1e-05, %v621_v0  ;;  %v605_v51 = vsub.f32 %v541_v1, %v573_v63  ;;  %v444_v23 = vpop.xlane.xlu1 %443  ;;  %v717_v25 = vsub.f32 %v2263_v49, %v2475_v28  ;;  %v733_v44 = vsub.f32 %v2270_v53, %v2487_v3 }
 0x13e   : > { %v442_v31 = vpop.xlane.xlu0 %441  ;;  %1812 = vrsqrt.f32 %v654_v9  ;;  %v638_v8 = vmax.f32 %v606_v62, 0.0  ;;  %v528_v38 = vmul.f32 0.0078125, %v444_v23  ;;  %1684 = vmatmul.mubr.bf16.gmra.mrb[4].mxu1 %v862_v30  ;;  %v734_v23 = vsub.f32 %v2268_v52, %v2485_v34 }
 0x13f   : > { %v637_v36 = vmax.f32 %v605_v51, 0.0  ;;  %1814 = vrsqrt.f32 %v653_v37  ;;  %v527_v32 = vmul.f32 0.0078125, %v442_v31  ;;  %v719_v53 = vsub.f32 %v2277_v56, %v2503_v12 }
 0x140   : > { %v670_v10 = vadd.f32 1e-05, %v638_v8  ;;  %v592_v40 = vsub.f32 %v528_v38, %v560_v22 }
 0x141   : > { %v669_v35 = vadd.f32 1e-05, %v637_v36  ;;  %v591_v46 = vsub.f32 %v527_v32, %v559_v39  ;;  %v476_v33 = vpop.xlane.xlu1 %475  ;;  %v720_v32 = vsub.f32 %v2275_v55, %v2500_v45 }
 0x142   : > { %v474_v43 = vpop.xlane.xlu0 %473  ;;  %1816 = vrsqrt.f32 %v670_v10  ;;  %v624_v47 = vmax.f32 %v592_v40, 0.0  ;;  %v544_v11 = vmul.f32 0.0078125, %v476_v33 }
 0x143   : > { %v543_v60 = vmul.f32 0.0078125, %v474_v43  ;;  %1818 = vrsqrt.f32 %v669_v35  ;;  %v623_v41 = vmax.f32 %v591_v46, 0.0 }
 0x144   : > { %v656_v21 = vadd.f32 1e-05, %v624_v47  ;;  %v608_v54 = vsub.f32 %v544_v11, %v576_v6  ;;  %v736_v47 = vsub.f32 %v2282_v58, %v2508_v29 }
 0x145   : > { %v607_v4 = vsub.f32 %v543_v60, %v575_v18  ;;  %v655_v63 = vadd.f32 1e-05, %v623_v41  ;;  %v352_v57 = vpop.xlane.xlu1 %351  ;;  %v735_v60 = vsub.f32 %v2284_v59, %v2510_v42 }
 0x146   : > { %v350_v61 = vpop.xlane.xlu0 %349  ;;  %1820 = vrsqrt.f32 %v656_v21  ;;  %v640_v2 = vmax.f32 %v608_v54, 0.0  ;;  %v2535_v3 = vmul.f32 0.0078125, %v352_v57 }
 0x147   : > { %v639_v24 = vmax.f32 %v607_v4, 0.0  ;;  %1822 = vrsqrt.f32 %v655_v63  ;;  %v2539_v55 = vmul.f32 0.0078125, %v350_v61 }
 0x148   : > { %v1813_v0 = vpop.eup %1812  ;;  %v672_v1 = vadd.f32 1e-05, %v640_v2  ;;  %v562_v41 = vmul.f32 %v2535_v3, %v2535_v3 }
 0x149   : > { %v671_v15 = vadd.f32 1e-05, %v639_v24  ;;  %v1815_v9 = vpop.eup %1814  ;;  %v384_v37 = vpop.xlane.xlu1 %383  ;;  %v750_v51 = vmul.f32 %v1813_v0, %v718_v50  ;;  %v561_v24 = vmul.f32 %v2539_v55, %v2539_v55 }
 0x14a   : > { %v382_v62 = vpop.xlane.xlu0 %381  ;;  %1824 = vrsqrt.f32 %v672_v1  ;;  %v749_v22 = vmul.f32 %v1815_v9, %v717_v25  ;;  %v2549_v21 = vmul.f32 0.0078125, %v384_v37 }
 0x14b   : > { %1826 = vrsqrt.f32 %v671_v15  ;;  %v789_v30 = vmul.f32 %v2387_v7, %v750_v51  ;;  %v2551_v54 = vmul.f32 0.0078125, %v382_v62 }
 0x14c   : > { %v1817_v48 = vpop.eup %1816  ;;  %v788_v8 = vmul.f32 %v2387_v7, %v749_v22  ;;  %v578_v1 = vmul.f32 %v2549_v21, %v2549_v21 }
 0x14d   : > { %v1819_v31 = vpop.eup %1818  ;;  %v356_v49 = vpop.xlane.xlu1 %355  ;;  %v828_v36 = vadd.f32 %v2392_v5, %v789_v30  ;;  %v766_v38 = vmul.f32 %v1817_v48, %v734_v23  ;;  %v577_v62 = vmul.f32 %v2551_v54, %v2551_v54 }
 0x14e   : > { %v354_v28 = vpop.xlane.xlu0 %353  ;;  %v765_v39 = vmul.f32 %v1819_v31, %v733_v44  ;;  %v827_v52 = vadd.f32 %v2392_v5, %v788_v8  ;;  %v2564_v51 = vmul.f32 0.0078125, %v356_v49 }
 0x14f   : > { %v805_v34 = vmul.f32 %v2387_v7, %v766_v38  ;;  %v2567_v38 = vmul.f32 0.0078125, %v354_v28 }
 0x150   : > { %v1821_v10 = vpop.eup %1820  ;;  %v855_v6 = vpack.c.bf16 %v828_v36, %v827_v52  ;;  %v804_v46 = vmul.f32 %v2387_v7, %v765_v39  ;;  %v564_v49 = vmul.f32 %v2564_v51, %v2564_v51 }
 0x151   : > { %v1823_v35 = vpop.eup %1822  ;;  %v388_v40 = vpop.xlane.xlu1 %387  ;;  %v844_v33 = vadd.f32 %v2392_v5, %v805_v34  ;;  %v752_v43 = vmul.f32 %v1821_v10, %v720_v32 }
 0x152   : > { %v386_v18 = vpop.xlane.xlu0 %385  ;;  %v751_v45 = vmul.f32 %v1823_v35, %v719_v53  ;;  %1671 = vmatprep.mubr.bf16.mxu0 %v855_v6  ;;  %v843_v56 = vadd.f32 %v2392_v5, %v804_v46  ;;  %v2572_v53 = vmul.f32 0.0078125, %v388_v40 }
 0x153   : > { %v791_v12 = vmul.f32 %v2387_v7, %v752_v43  ;;  %v2574_v35 = vmul.f32 0.0078125, %v386_v18 }
 0x154   : > { %v1825_v11 = vpop.eup %1824  ;;  %v863_v57 = vpack.c.bf16 %v844_v33, %v843_v56  ;;  %v790_v29 = vmul.f32 %v2387_v7, %v751_v45  ;;  %v580_v40 = vmul.f32 %v2572_v53, %v2572_v53 }
 0x155   : > { %v1827_v4 = vpop.eup %1826  ;;  %v448_v63 = vpop.xlane.xlu1 %447  ;;  %v830_v61 = vadd.f32 %v2392_v5, %v791_v12  ;;  %v768_v2 = vmul.f32 %v1825_v11, %v736_v47  ;;  %v563_v47 = vmul.f32 %v2567_v38, %v2567_v38  ;;  %v579_v18 = vmul.f32 %v2574_v35, %v2574_v35 }
 0x156   : > { %v446_v58 = vpop.xlane.xlu0 %445  ;;  %v530_v59 = vmul.f32 0.0078125, %v448_v63  ;;  %v767_v50 = vmul.f32 %v1827_v4, %v735_v60  ;;  %1687 = vmatprep.mubr.bf16.mxu1 %v863_v57  ;;  %v829_v0 = vadd.f32 %v2392_v5, %v790_v29 }
 0x157   : > { %v529_v42 = vmul.f32 0.0078125, %v446_v58  ;;  %v807_v25 = vmul.f32 %v2387_v7, %v768_v2 }
 0x158   : > { %v594_v15 = vsub.f32 %v530_v59, %v562_v41  ;;  %v806_v37 = vmul.f32 %v2387_v7, %v767_v50  ;;  %v856_v23 = vpack.c.bf16 %v830_v61, %v829_v0 }
 0x159   : > { %v593_v9 = vsub.f32 %v529_v42, %v561_v24  ;;  %v480_v22 = vpop.xlane.xlu1 %479  ;;  %v846_v48 = vadd.f32 %v2392_v5, %v807_v25  ;;  %v722_v25 = vsub.f32 %v2305_v13, %v2535_v3  ;;  %v737_v13 = vsub.f32 %v2314_v17, %v2551_v54 }
 0x15a   : > { %v478_v30 = vpop.xlane.xlu0 %477  ;;  %v626_v44 = vmax.f32 %v594_v15, 0.0  ;;  %v546_v8 = vmul.f32 0.0078125, %v480_v22  ;;  %1672 = vmatmul.mubr.bf16.gmra.mrb[8].mxu0 %v856_v23  ;;  %v845_v39 = vadd.f32 %v2392_v5, %v806_v37  ;;  %v721_v15 = vsub.f32 %v2307_v14, %v2539_v55 }
 0x15b   : > { %v625_v31 = vmax.f32 %v593_v9, 0.0  ;;  %v545_v36 = vmul.f32 0.0078125, %v478_v30  ;;  %v738_v30 = vsub.f32 %v2312_v16, %v2549_v21 }
 0x15c   : > { %v658_v32 = vadd.f32 1e-05, %v626_v44  ;;  %v610_v34 = vsub.f32 %v546_v8, %v578_v1  ;;  %v864_v46 = vpack.c.bf16 %v846_v48, %v845_v39  ;;  %v724_v39 = vsub.f32 %v2319_v19, %v2564_v51 }
 0x15d   : > { %v657_v52 = vadd.f32 1e-05, %v625_v31  ;;  %v609_v10 = vsub.f32 %v545_v36, %v577_v62  ;;  %v452_v6 = vpop.xlane.xlu1 %451  ;;  %v740_v19 = vsub.f32 %v2326_v26, %v2572_v53 }
 0x15e   : > { %v450_v33 = vpop.xlane.xlu0 %449  ;;  %1828 = vrsqrt.f32 %v658_v32  ;;  %v642_v28 = vmax.f32 %v610_v34, 0.0  ;;  %v532_v45 = vmul.f32 0.0078125, %v452_v6  ;;  %1688 = vmatmul.mubr.bf16.gmra.mrb[8].mxu1 %v864_v46  ;;  %v723_v32 = vsub.f32 %v2321_v20, %v2567_v38 }
 0x15f   : > { %v641_v43 = vmax.f32 %v609_v10, 0.0  ;;  %1830 = vrsqrt.f32 %v657_v52  ;;  %v531_v56 = vmul.f32 0.0078125, %v450_v33  ;;  %v739_v20 = vsub.f32 %v2328_v27, %v2574_v35 }
 0x160   : > { %v674_v12 = vadd.f32 1e-05, %v642_v28  ;;  %v596_v60 = vsub.f32 %v532_v45, %v564_v49 }
 0x161   : > { %v673_v11 = vadd.f32 1e-05, %v641_v43  ;;  %v595_v41 = vsub.f32 %v531_v56, %v563_v47  ;;  %v484_v4 = vpop.xlane.xlu1 %483 }
 0x162   : > { %v482_v63 = vpop.xlane.xlu0 %481  ;;  %1832 = vrsqrt.f32 %v674_v12  ;;  %v628_v57 = vmax.f32 %v596_v60, 0.0  ;;  %v548_v58 = vmul.f32 0.0078125, %v484_v4 }
 0x163   : > { %v547_v29 = vmul.f32 0.0078125, %v482_v63  ;;  %1834 = vrsqrt.f32 %v673_v11  ;;  %v627_v61 = vmax.f32 %v595_v41, 0.0 }
 0x164   : > { %v660_v2 = vadd.f32 1e-05, %v628_v57  ;;  %v612_v24 = vsub.f32 %v548_v58, %v580_v40  ;;  %v2617_v40 = vld [vmem:[%s2726_s4] ss:$0 sm:$0xff] }
 0x165   : > { %v611_v59 = vsub.f32 %v547_v29, %v579_v18  ;;  %v659_v42 = vadd.f32 1e-05, %v627_v61 }
 0x166   : > { %1836 = vrsqrt.f32 %v660_v2  ;;  %v644_v50 = vmax.f32 %v612_v24, 0.0 }
 0x167   : > { %v643_v0 = vmax.f32 %v611_v59, 0.0  ;;  %1838 = vrsqrt.f32 %v659_v42 }
 0x168   : > { %v1829_v1 = vpop.eup %1828  ;;  %v676_v9 = vadd.f32 1e-05, %v644_v50 }
 0x169   : > { %v675_v37 = vadd.f32 1e-05, %v643_v0  ;;  %v1831_v62 = vpop.eup %1830  ;;  %v754_v22 = vmul.f32 %v1829_v1, %v722_v25 }
 0x16a   : > { %1840 = vrsqrt.f32 %v676_v9  ;;  %v753_v23 = vmul.f32 %v1831_v62, %v721_v15 }
 0x16b   : > { %1842 = vrsqrt.f32 %v675_v37  ;;  %v793_v48 = vmul.f32 %v2387_v7, %v754_v22 }
 0x16c   : > { %v1833_v44 = vpop.eup %1832  ;;  %v792_v3 = vmul.f32 %v2387_v7, %v753_v23 }
 0x16d   : > { %v1835_v31 = vpop.eup %1834  ;;  %v832_v14 = vadd.f32 %v2392_v5, %v793_v48  ;;  %v770_v55 = vmul.f32 %v1833_v44, %v738_v30 }
 0x16e   : > { %v831_v8 = vadd.f32 %v2392_v5, %v792_v3  ;;  %v769_v36 = vmul.f32 %v1835_v31, %v737_v13 }
 0x16f   : > { %v809_v16 = vmul.f32 %v2387_v7, %v770_v55 }
 0x170   : > { %v1837_v21 = vpop.eup %1836  ;;  %v857_v52 = vpack.c.bf16 %v832_v14, %v831_v8  ;;  %v808_v17 = vmul.f32 %v2387_v7, %v769_v36 }
 0x171   : > { %v1839_v54 = vpop.eup %1838  ;;  %v848_v34 = vadd.f32 %v2392_v5, %v809_v16  ;;  %v756_v10 = vmul.f32 %v1837_v21, %v724_v39 }
 0x172   : > { %1675 = vmatprep.mubr.bf16.mxu0 %v857_v52  ;;  %v847_v49 = vadd.f32 %v2392_v5, %v808_v17  ;;  %v755_v6 = vmul.f32 %v1839_v54, %v723_v32 }
 0x173   : > { %v795_v51 = vmul.f32 %v2387_v7, %v756_v10 }
 0x174   : > { %v1841_v46 = vpop.eup %1840  ;;  %v865_v38 = vpack.c.bf16 %v848_v34, %v847_v49  ;;  %v794_v33 = vmul.f32 %v2387_v7, %v755_v6 }
 0x175   : > { %v1843_v28 = vpop.eup %1842  ;;  %v834_v43 = vadd.f32 %v2392_v5, %v795_v51  ;;  %v772_v45 = vmul.f32 %v1841_v46, %v740_v19 }
 0x176   : > { %1691 = vmatprep.mubr.bf16.mxu1 %v865_v38  ;;  %v833_v47 = vadd.f32 %v2392_v5, %v794_v33  ;;  %v771_v56 = vmul.f32 %v1843_v28, %v739_v20 }
 0x177   : > { %v811_v12 = vmul.f32 %v2387_v7, %v772_v45 }
 0x178   : > { %v858_v26 = vpack.c.bf16 %v834_v43, %v833_v47  ;;  %v810_v53 = vmul.f32 %v2387_v7, %v771_v56 }
 0x179   : > { %v850_v11 = vadd.f32 %v2392_v5, %v811_v12 }
 0x17a   : > { %1676 = vmatmul.mubr.bf16.gmra.mrb[12].mxu0 %v858_v26  ;;  %v849_v27 = vadd.f32 %v2392_v5, %v810_v53 }
 0x17c   : > { %v866_v35 = vpack.c.bf16 %v850_v11, %v849_v27 }
 0x17e   : > { %1692 = vmatmul.mubr.bf16.gmra.mrb[12].mxu1 %v866_v35 }
 0x1ed   : > { %v1665_v60 = vpop.f32.mrb[0].mxu0 }
 0x1ee   : > { %v972_v18 = vpop.f32.mrb[1].mxu0  ;;  %v981_v4 = vadd.f32 %v1665_v60, %v2617_v40 }
 0x1ef   : > { %v1666_v41 = vpop.f32.mrb[2].mxu0  ;;  %v973_v57 = vadd.f32 %v2617_v40, %v972_v18 }
 0x1f0   : > { %v984_v7 = vadd.f32 %v1666_v41, %v2617_v40  ;;  %v975_v63 = vpop.f32.mrb[3].mxu0 }
 0x1f1   : > { %v976_v5 = vadd.f32 %v2617_v40, %v975_v63  ;;  %v1681_v58 = vpop.f32.mrb[0].mxu1 }
 0x1f2   : > { %v1521_v29 = vpack.c.bf16 %v984_v7, %v981_v4  ;;  %v1036_v61 = vpop.f32.mrb[1].mxu1  ;;  %v1045_v59 = vadd.f32 %v1681_v58, %v2617_v40 }
 0x1f3   : > { %v1516_v2 = vpack.c.bf16 %v976_v5, %v973_v57  ;;  %v1682_v24 = vpop.f32.mrb[2].mxu1  ;;  %v1037_v0 = vadd.f32 %v2617_v40, %v1036_v61 }
 0x1f4   : > { %1608 = vst [vmem:[%s2625_s15 + $0x8] sm:$0xff] %v1521_v29   ;;  %v1048_v42 = vadd.f32 %v1682_v24, %v2617_v40  ;;  %v1039_v50 = vpop.f32.mrb[3].mxu1 }
 0x1f5   : > { %1517 = vst [vmem:[%s2625_s15] sm:$0xff] %v1516_v2   ;;  %v1040_v25 = vadd.f32 %v2617_v40, %v1039_v50 }
 0x1f6   : > { %v1561_v1 = vpack.c.bf16 %v1048_v42, %v1045_v59 }
 0x1f7   : > { %v1556_v15 = vpack.c.bf16 %v1040_v25, %v1037_v0 }
 0x1f8   : > { %1616 = vst [vmem:[%s2625_s15 + $0x48] sm:$0xff] %v1561_v1  }
 0x1f9   : > { %1615 = vst [vmem:[%s2625_s15 + $0x40] sm:$0xff] %v1556_v15  }
 0x20d   : > { %v1669_v9 = vpop.f32.mrb[4].mxu0 }
 0x20e   : > { %v988_v37 = vpop.f32.mrb[5].mxu0  ;;  %v997_v22 = vadd.f32 %v1669_v9, %v2617_v40 }
 0x20f   : > { %v1670_v62 = vpop.f32.mrb[6].mxu0  ;;  %v989_v48 = vadd.f32 %v2617_v40, %v988_v37 }
 0x210   : > { %v1000_v23 = vadd.f32 %v1670_v62, %v2617_v40  ;;  %v991_v30 = vpop.f32.mrb[7].mxu0 }
 0x211   : > { %v992_v44 = vadd.f32 %v2617_v40, %v991_v30  ;;  %v1685_v13 = vpop.f32.mrb[4].mxu1 }
 0x212   : > { %v1531_v3 = vpack.c.bf16 %v1000_v23, %v997_v22  ;;  %v1052_v31 = vpop.f32.mrb[5].mxu1  ;;  %v1061_v8 = vadd.f32 %v1685_v13, %v2617_v40 }
 0x213   : > { %v1526_v14 = vpack.c.bf16 %v992_v44, %v989_v48  ;;  %v1686_v55 = vpop.f32.mrb[6].mxu1  ;;  %v1053_v16 = vadd.f32 %v2617_v40, %v1052_v31 }
 0x214   : > { %1610 = vst [vmem:[%s2625_s15 + $0x18] sm:$0xff] %v1531_v3   ;;  %v1064_v36 = vadd.f32 %v1686_v55, %v2617_v40  ;;  %v1055_v39 = vpop.f32.mrb[7].mxu1 }
 0x215   : > { %1609 = vst [vmem:[%s2625_s15 + $0x10] sm:$0xff] %v1526_v14   ;;  %v1056_v21 = vadd.f32 %v2617_v40, %v1055_v39 }
 0x216   : > { %v1571_v32 = vpack.c.bf16 %v1064_v36, %v1061_v8 }
 0x217   : > { %v1566_v52 = vpack.c.bf16 %v1056_v21, %v1053_v16 }
 0x218   : > { %1618 = vst [vmem:[%s2625_s15 + $0x58] sm:$0xff] %v1571_v32  }
 0x219   : > { %1617 = vst [vmem:[%s2625_s15 + $0x50] sm:$0xff] %v1566_v52  }
 0x22d   : > { %v1673_v17 = vpop.f32.mrb[8].mxu0 }
 0x22e   : > { %v1004_v54 = vpop.f32.mrb[9].mxu0  ;;  %v1013_v10 = vadd.f32 %v1673_v17, %v2617_v40 }
 0x22f   : > { %v1674_v34 = vpop.f32.mrb[10].mxu0  ;;  %v1005_v19 = vadd.f32 %v2617_v40, %v1004_v54 }
 0x230   : > { %v1016_v49 = vadd.f32 %v1674_v34, %v2617_v40  ;;  %v1007_v6 = vpop.f32.mrb[11].mxu0 }
 0x231   : > { %v1008_v51 = vadd.f32 %v2617_v40, %v1007_v6  ;;  %v1689_v46 = vpop.f32.mrb[8].mxu1 }
 0x232   : > { %v1541_v20 = vpack.c.bf16 %v1016_v49, %v1013_v10  ;;  %v1068_v38 = vpop.f32.mrb[9].mxu1  ;;  %v1077_v43 = vadd.f32 %v1689_v46, %v2617_v40 }
 0x233   : > { %v1536_v33 = vpack.c.bf16 %v1008_v51, %v1005_v19  ;;  %v1690_v28 = vpop.f32.mrb[10].mxu1  ;;  %v1069_v56 = vadd.f32 %v2617_v40, %v1068_v38 }
 0x234   : > { %1612 = vst [vmem:[%s2625_s15 + $0x28] sm:$0xff] %v1541_v20   ;;  %v1080_v45 = vadd.f32 %v1690_v28, %v2617_v40  ;;  %v1071_v47 = vpop.f32.mrb[11].mxu1 }
 0x235   : > { %1611 = vst [vmem:[%s2625_s15 + $0x20] sm:$0xff] %v1536_v33   ;;  %v1072_v12 = vadd.f32 %v2617_v40, %v1071_v47 }
 0x236   : > { %v1581_v26 = vpack.c.bf16 %v1080_v45, %v1077_v43 }
 0x237   : > { %v1576_v53 = vpack.c.bf16 %v1072_v12, %v1069_v56 }
 0x238   : > { %1620 = vst [vmem:[%s2625_s15 + $0x68] sm:$0xff] %v1581_v26  }
 0x239   : > { %1619 = vst [vmem:[%s2625_s15 + $0x60] sm:$0xff] %v1576_v53  }
 0x24d   : > { %v1677_v11 = vpop.f32.mrb[12].mxu0 }
 0x24e   : > { %v1020_v27 = vpop.f32.mrb[13].mxu0  ;;  %v1029_v60 = vadd.f32 %v1677_v11, %v2617_v40 }
 0x24f   : > { %v1678_v35 = vpop.f32.mrb[14].mxu0  ;;  %v1021_v4 = vadd.f32 %v2617_v40, %v1020_v27 }
 0x250   : > { %v1032_v18 = vadd.f32 %v1678_v35, %v2617_v40  ;;  %v1023_v41 = vpop.f32.mrb[15].mxu0 }
 0x251   : > { %v1024_v7 = vadd.f32 %v2617_v40, %v1023_v41  ;;  %v1693_v63 = vpop.f32.mrb[12].mxu1 }
 0x252   : > { %v1551_v57 = vpack.c.bf16 %v1032_v18, %v1029_v60  ;;  %v1084_v5 = vpop.f32.mrb[13].mxu1  ;;  %v1093_v61 = vadd.f32 %v1693_v63, %v2617_v40 }
 0x253   : > { %v1546_v58 = vpack.c.bf16 %v1024_v7, %v1021_v4  ;;  %v1694_v29 = vpop.f32.mrb[14].mxu1  ;;  %v1085_v59 = vadd.f32 %v2617_v40, %v1084_v5 }
 0x254   : > { %1614 = vst [vmem:[%s2625_s15 + $0x38] sm:$0xff] %v1551_v57   ;;  %v1096_v2 = vadd.f32 %v1694_v29, %v2617_v40  ;;  %v1087_v24 = vpop.f32.mrb[15].mxu1 }
 0x255   : > { %1613 = vst [vmem:[%s2625_s15 + $0x30] sm:$0xff] %v1546_v58   ;;  %v1088_v42 = vadd.f32 %v2617_v40, %v1087_v24 }
 0x256   : > { %v1591_v50 = vpack.c.bf16 %v1096_v2, %v1093_v61 }
 0x257   : > { %v1586_v0 = vpack.c.bf16 %v1088_v42, %v1085_v59 }
 0x258   : > { %1622 = vst [vmem:[%s2625_s15 + $0x78] sm:$0xff] %v1591_v50  }
 0x259   : > { %1621 = vst [vmem:[%s2625_s15 + $0x70] sm:$0xff] %v1586_v0  }
 0x25a   : > { %1915 = shalt.err (!%p1912_p7)
}
 0x25b   : > { %s1916_s26 = scalar_lea.hbm %s2674_s10, 2048  ;;  %s1920_s14 = scalar_lea.hbm %s2727_s5, 4096 }
 0x25c   : > { %p1917_p9 = scmp.ne.s32.totalorder %s2674_s10, %s1916_s26  ;;  %p1921_p5 = scmp.lt.u32.totalorder %s2674_s10, %s2727_s5 }
 0x25d   : > { %p1922_p11 = scmp.lt.u32.totalorder %s1920_s14, %s1916_s26  ;;  %p1924_p4 = scmp.lt.u32.totalorder %s1916_s26, %s2674_s10 }
 0x25e   : > { %p1918_p1 = pnand %p1917_p9, %p2105_p12 }
 0x25f   : > { %p1923_p2 = por %p1922_p11, %p1921_p5 }
 0x260   : > { %p1919_p0 = pneg %p1918_p1 }
 0x261   : > { %p1925_p6 = por %p1924_p4, %p1923_p2 }
 0x263   : > { %p1926_p8 = pnand %p1925_p6, %p1919_p0 }
 0x265   : > { %1929 = shalt.err (!%p1926_p8)
}
 0x266   : > { %s1979_s13 = smov 64   ;;  %s1980_s28 = smov 4  }
 0x267   : > { %1717 = dma.vmem_to_hbm [thread:$0]  (%p2105_p12), %s2676_s29, 2048, %s2674_s10, %s1260_s22, %s1979_s13, %s1979_s13, %s1980_s28  }
 0x268 PF: > { %s1288_s27 = sand.u32 1, %s1960_s18   ;;  %p2742_p10 = scmp.ne.s32.totalorder %s2732_s25, 0 }
 0x269   : > { %p2743_p13 = scmp.ge.s32.totalorder %s1972_s21, 2  ;;  %s1289_s11 = scalar_lea.sflag [#allocation4], %s1288_s27 }
 0x26b   : > { %p1728_p3 = pnand %p2743_p13, %p2742_p10 }
 0x26d   : > { %1955 = dma.done.wait (!%p1728_p3), %s1289_s11, 2048  }
 0x26e   : > { %1957 = vsyncadd (!%p1728_p3), %s1289_s11, 4294965248  ;;  %p19_p7 = scmp.ge.s32.totalorder %s2067_s30, 4   ;;  %s2744_s18 = smov %s1964_s19 }
 0x26f   : > { %s2745_s19 = smov %s1968_s20  ;;  %s2746_s20 = smov %s2101_s8 }
 0x270   : > { %s2747_s21 = smov %s2067_s30  ;;  %21 = sbr.rel (!%p19_p7) target bundleno = 6 (0x6), region = 89 }
 0x277   :  { %1294 = vsyncpa [#allocation3], 1 }
 0x278   :  { %1296 = vsyncpa [#allocation3 + $0x1], 1 }
 0x279   :  { %1297 = vsyncpa [#allocation6], 1 }
 0x27a   :  { %1298 = vsyncpa [#allocation4], 1 }
 0x27b   :  { %1300 = vsyncpa [#allocation4 + $0x1], 1 }

</bundles_post_ra>
